<compile_context>
chip_gen: v5e
topology: v5e:2x2
jax: 0.10.0
libtpu: 0.0.40
codegen_flags: <defaults>
</compile_context>

<pallas_src>
import functools
import math

import jax
import jax.numpy as jnp
from jax.experimental import pallas as pl
from jax.experimental.pallas import tpu as pltpu


def _label_smoothing_kernel(tgt_ref, out_ref, part_ref, acc_ref, *,
                            confidence, smoothing, log_conf, log_smooth,
                            pad_idx, vocab, tile_v):
    j = pl.program_id(1)

    @pl.when(j == 0)
    def _():
        acc_ref[...] = jnp.zeros_like(acc_ref)

    tgt = tgt_ref[...]                          # (TB, 1) int32
    out = out_ref[...].astype(jnp.float32)      # (TB, TV) log-probs
    tb, tv = out.shape

    # Static column iota; shift the comparands by the tile offset instead of the iota.
    col = jax.lax.broadcasted_iota(jnp.int32, (tb, tv), 1)
    base = j * tile_v

    is_tgt_col = col == (tgt - base)                              # (TB, TV)
    zero_col = (col == (pad_idx - base)) | (col >= (vocab - base))  # pad col / padded vocab
    is_pad_row = tgt == pad_idx                                   # (TB, 1)

    # log(confidence) / log(smoothing) are trace-time constants -> pure VPU work, no EUP.
    kl_conf = confidence * (log_conf - out)
    kl_smooth = smoothing * (log_smooth - out)
    kl = jnp.where(is_tgt_col, kl_conf, jnp.where(zero_col, 0.0, kl_smooth))
    kl = jnp.where(is_pad_row, 0.0, kl)

    acc_ref[...] += kl

    @pl.when(j == pl.num_programs(1) - 1)
    def _():
        part_ref[...] = jnp.full(part_ref.shape, jnp.sum(acc_ref[...]),
                                 dtype=part_ref.dtype)


def label_smoothing_loss(output, target, *, label_smoothing, tgt_vocab_size,
                         ignore_index, tile_v=512, tile_b=None):
    """output: (B, V) float log-probs (f32 or bf16); target: (B,) int. Returns scalar f32."""
    assert 0.0 < label_smoothing <= 1.0
    B, V = output.shape
    smoothing = label_smoothing / (tgt_vocab_size - 2)
    confidence = 1.0 - label_smoothing
    log_smooth = math.log(smoothing) if smoothing > 0.0 else 0.0
    log_conf = math.log(confidence) if confidence > 0.0 else 0.0

    # Tile selection: lane dim multiple of 128, sublane dim multiple of 8.
    tile_v = min(tile_v, pl.cdiv(V, 128) * 128)
    if tile_b is None:
        tile_b = min(128, pl.cdiv(B, 8) * 8)
    b_pad = pl.cdiv(B, tile_b) * tile_b
    v_pad = pl.cdiv(V, tile_v) * tile_v

    tgt = target.reshape(B, 1).astype(jnp.int32)
    if b_pad != B:
        # Padded rows carry the pad index -> contribute exactly 0.
        tgt = jnp.pad(tgt, ((0, b_pad - B), (0, 0)), constant_values=ignore_index)
        output = jnp.pad(output, ((0, b_pad - B), (0, 0)))
    if v_pad != V:
        # Padded columns are zeroed inside the kernel via the col >= vocab mask.
        output = jnp.pad(output, ((0, 0), (0, v_pad - V)))

    n_bb = b_pad // tile_b
    n_vb = v_pad // tile_v

    kernel = functools.partial(
        _label_smoothing_kernel,
        confidence=float(confidence), smoothing=float(smoothing),
        log_conf=float(log_conf), log_smooth=float(log_smooth),
        pad_idx=int(ignore_index), vocab=int(V), tile_v=int(tile_v))

    itemsize = jnp.dtype(output.dtype).itemsize
    cost = pl.CostEstimate(
        flops=6 * b_pad * v_pad,
        transcendentals=0,
        bytes_accessed=b_pad * v_pad * itemsize + b_pad * 4 + n_bb * 128 * 4)

    vmem_need = (2 * tile_b * tile_v * itemsize   # double-buffered log-prob tile
                 + 2 * tile_b * 128 * 4           # target block (lane-padded)
                 + tile_b * tile_v * 4            # f32 accumulator scratch
                 + 2 * 128 * 4)                   # partial-sum output block
    vmem_limit = int(min(max(2 * vmem_need, 16 * 1024 * 1024), 100 * 1024 * 1024))

    partials = pl.pallas_call(
        kernel,
        out_shape=jax.ShapeDtypeStruct((n_bb, 128), jnp.float32),
        grid_spec=pltpu.PrefetchScalarGridSpec(
            num_scalar_prefetch=0,
            grid=(n_bb, n_vb),
            in_specs=[
                # target column vector: track only the batch block, resident across j
                pl.BlockSpec((tile_b, 1), lambda i, j: (i, 0)),
                # log-prob tile: one (batch block, vocab block)
                pl.BlockSpec((tile_b, tile_v), lambda i, j: (i, j)),
            ],
            out_specs=pl.BlockSpec((1, 128), lambda i, j: (i, 0)),
            scratch_shapes=[pltpu.VMEM((tile_b, tile_v), jnp.float32)],
        ),
        compiler_params=pltpu.CompilerParams(
            dimension_semantics=("parallel", "arbitrary"),
            vmem_limit_bytes=vmem_limit),
        cost_estimate=cost,
    )(tgt, output)

    return jnp.sum(partials[:, 0])


def _reference_loss(output, target, *, label_smoothing, tgt_vocab_size,
                    ignore_index):
    smoothing_value = label_smoothing / (tgt_vocab_size - 2)
    confidence = 1.0 - label_smoothing
    B, V = output.shape
    p = jnp.full((B, V), smoothing_value, dtype=jnp.float32)
    p = p.at[:, ignore_index].set(0.0)
    p = jnp.where(jax.nn.one_hot(target, V, dtype=bool), confidence, p)
    p = jnp.where((target == ignore_index)[:, None], 0.0, p)
    kl = jnp.where(p > 0.0, p * (jnp.log(p) - output.astype(jnp.float32)), 0.0)
    return jnp.sum(kl)


if __name__ == "__main__":
    B = 8
    V = 512
    LABEL_SMOOTHING = 0.1
    PAD_IDX = 0          # padding token id (PreSum passes the pad symbol id)

    key = jax.random.PRNGKey(0)
    k_logits, k_tgt = jax.random.split(key)

    logits = jax.random.normal(k_logits, (B, V), dtype=jnp.float32)
    log_probs = jax.nn.log_softmax(logits, axis=-1)  # F.kl_div expects log-probs
    target = jax.random.randint(k_tgt, (B,), 1, V, dtype=jnp.int32)
    target = target.at[3].set(PAD_IDX)               # one padded row

    loss = label_smoothing_loss(
        log_probs, target,
        label_smoothing=LABEL_SMOOTHING,
        tgt_vocab_size=V,
        ignore_index=PAD_IDX,
    )
    loss = jax.block_until_ready(loss)

    ref = _reference_loss(
        log_probs, target,
        label_smoothing=LABEL_SMOOTHING,
        tgt_vocab_size=V,
        ignore_index=PAD_IDX,
    )
    assert jnp.allclose(loss, ref, rtol=1e-5, atol=1e-5), (loss, ref)
    print("KERNEL_OK")
</pallas_src>

<mosaic_0001>
module attributes {stable_mosaic.version = 11 : i64} {
  func.func @_label_smoothing_kernel(%arg0: i32, %arg1: i32, %arg2: memref<8x1xi32, #tpu.memory_space<vmem>>, %arg3: memref<8x512xf32, #tpu.memory_space<vmem>>, %arg4: memref<1x128xf32, #tpu.memory_space<vmem>>, %arg5: memref<8x512xf32, #tpu.memory_space<vmem>>) attributes {dimension_semantics = [#tpu.dimension_semantics<parallel>, #tpu.dimension_semantics<arbitrary>], iteration_bounds = array<i64: 1, 1>, scalar_prefetch = 0 : i64, scratch_operands = 1 : i64, tpu.core_type = #tpu.core_type<tc>, window_params = [{transform_indices = @transform_0, window_bounds = array<i64: 8, 1>}, {transform_indices = @transform_1, window_bounds = array<i64: 8, 512>}, {transform_indices = @transform_2, window_bounds = array<i64: 1, 128>}]} {
    %c0_i32 = arith.constant 0 : i32
    %0 = arith.cmpi eq, %arg1, %c0_i32 : i32
    %1 = arith.extui %0 : i1 to i32
    %c0_i32_0 = arith.constant 0 : i32
    %2 = arith.cmpi ne, %1, %c0_i32_0 : i32
    scf.if %2 {
      %cst_18 = arith.constant 0.000000e+00 : f32
      %41 = vector.broadcast %cst_18 : f32 to vector<8x512xf32>
      %c0_19 = arith.constant 0 : index
      %c0_20 = arith.constant 0 : index
      %42 = vector.load %arg5[%c0_19, %c0_20] : memref<8x512xf32, #tpu.memory_space<vmem>>, vector<8x512xf32>
      tpu.vector_store %arg5[%c0_19, %c0_20], %41 {strides = array<i32>} : memref<8x512xf32, #tpu.memory_space<vmem>>, vector<8x512xf32>,
    } else {
    }
    %c0 = arith.constant 0 : index
    %c0_1 = arith.constant 0 : index
    %3 = vector.load %arg2[%c0, %c0_1] : memref<8x1xi32, #tpu.memory_space<vmem>>, vector<8x1xi32>
    %c0_2 = arith.constant 0 : index
    %c0_3 = arith.constant 0 : index
    %4 = vector.load %arg3[%c0_2, %c0_3] : memref<8x512xf32, #tpu.memory_space<vmem>>, vector<8x512xf32>
    %5 = tpu.iota {dimensions = array<i32: 1>} : vector<8x512xi32>
    %c512_i32 = arith.constant 512 : i32
    %6 = arith.muli %arg1, %c512_i32 : i32
    %7 = vector.broadcast %6 : i32 to vector<8x1xi32>
    %8 = arith.subi %3, %7 : vector<8x1xi32>
    %9 = vector.broadcast %8 : vector<8x1xi32> to vector<8x512xi32>
    %10 = arith.cmpi eq, %5, %9 : vector<8x512xi32>
    %c0_i32_4 = arith.constant 0 : i32
    %11 = arith.subi %c0_i32_4, %6 : i32
    %12 = vector.broadcast %11 : i32 to vector<8x512xi32>
    %13 = arith.cmpi eq, %5, %12 : vector<8x512xi32>
    %c512_i32_5 = arith.constant 512 : i32
    %14 = arith.subi %c512_i32_5, %6 : i32
    %15 = vector.broadcast %14 : i32 to vector<8x512xi32>
    %16 = arith.cmpi sge, %5, %15 : vector<8x512xi32>
    %17 = arith.ori %13, %16 : vector<8x512xi1>
    %c0_i32_6 = arith.constant 0 : i32
    %18 = vector.broadcast %c0_i32_6 : i32 to vector<8x1xi32>
    %19 = arith.cmpi eq, %3, %18 : vector<8x1xi32>
    %cst = arith.constant -0.105360515 : f32
    %20 = vector.broadcast %cst : f32 to vector<8x512xf32>
    %21 = arith.subf %20, %4 : vector<8x512xf32>
    %cst_7 = arith.constant 0.899999976 : f32
    %22 = vector.broadcast %cst_7 : f32 to vector<8x512xf32>
    %23 = arith.mulf %22, %21 : vector<8x512xf32>
    %cst_8 = arith.constant -8.53699588 : f32
    %24 = vector.broadcast %cst_8 : f32 to vector<8x512xf32>
    %25 = arith.subf %24, %4 : vector<8x512xf32>
    %cst_9 = arith.constant 1.96078428E-4 : f32
    %26 = vector.broadcast %cst_9 : f32 to vector<8x512xf32>
    %27 = arith.mulf %26, %25 : vector<8x512xf32>
    %cst_10 = arith.constant 0.000000e+00 : f32
    %28 = vector.broadcast %cst_10 : f32 to vector<8x512xf32>
    %29 = arith.select %17, %28, %27 : vector<8x512xi1>, vector<8x512xf32>
    %30 = arith.select %10, %23, %29 : vector<8x512xi1>, vector<8x512xf32>
    %cst_11 = arith.constant 0.000000e+00 : f32
    %31 = vector.shape_cast %19 : vector<8x1xi1> to vector<8x1xi1>
    %32 = vector.broadcast %31 : vector<8x1xi1> to vector<8x512xi1>
    %33 = vector.broadcast %cst_11 : f32 to vector<8x512xf32>
    %34 = arith.select %32, %33, %30 : vector<8x512xi1>, vector<8x512xf32>
    %c0_12 = arith.constant 0 : index
    %c0_13 = arith.constant 0 : index
    %35 = vector.load %arg5[%c0_12, %c0_13] : memref<8x512xf32, #tpu.memory_space<vmem>>, vector<8x512xf32>
    %36 = arith.addf %35, %34 : vector<8x512xf32>
    %c0_14 = arith.constant 0 : index
    %c0_15 = arith.constant 0 : index
    %37 = vector.load %arg5[%c0_14, %c0_15] : memref<8x512xf32, #tpu.memory_space<vmem>>, vector<8x512xf32>
    tpu.vector_store %arg5[%c0_14, %c0_15], %36 {strides = array<i32>} : memref<8x512xf32, #tpu.memory_space<vmem>>, vector<8x512xf32>,
    %c0_i32_16 = arith.constant 0 : i32
    %38 = arith.cmpi eq, %arg1, %c0_i32_16 : i32
    %39 = arith.extui %38 : i1 to i32
    %c0_i32_17 = arith.constant 0 : i32
    %40 = arith.cmpi ne, %39, %c0_i32_17 : i32
    scf.if %40 {
      %c0_18 = arith.constant 0 : index
      %c0_19 = arith.constant 0 : index
      %41 = vector.load %arg5[%c0_18, %c0_19] : memref<8x512xf32, #tpu.memory_space<vmem>>, vector<8x512xf32>
      %42 = vector.shape_cast %41 : vector<8x512xf32> to vector<1x8x512xf32>
      %cst_20 = arith.constant dense<0.000000e+00> : vector<1xf32>
      %43 = vector.multi_reduction <add>, %42, %cst_20 [1, 2] : vector<1x8x512xf32> to vector<1xf32>
      %44 = vector.shape_cast %43 : vector<1xf32> to vector<1x1x1xf32>
      %45 = vector.extract %44[0, 0, 0] : f32 from vector<1x1x1xf32>
      %46 = vector.broadcast %45 : f32 to vector<1x128xf32>
      %c0_21 = arith.constant 0 : index
      %c0_22 = arith.constant 0 : index
      %47 = vector.load %arg4[%c0_21, %c0_22] : memref<1x128xf32, #tpu.memory_space<vmem>>, vector<1x128xf32>
      tpu.vector_store %arg4[%c0_21, %c0_22], %46 {strides = array<i32>} : memref<1x128xf32, #tpu.memory_space<vmem>>, vector<1x128xf32>,
    } else {
    }
    return
  }
  func.func @transform_0(%arg0: i32, %arg1: i32) -> (i32, i32) {
    %c0_i32 = arith.constant 0 : i32
    %c0_i32_0 = arith.constant 0 : i32
    return %arg0, %c0_i32 : i32, i32
  }
  func.func @transform_1(%arg0: i32, %arg1: i32) -> (i32, i32) {
    %c0_i32 = arith.constant 0 : i32
    return %arg0, %arg1 : i32, i32
  }
  func.func @transform_2(%arg0: i32, %arg1: i32) -> (i32, i32) {
    %c0_i32 = arith.constant 0 : i32
    %c0_i32_0 = arith.constant 0 : i32
    return %arg0, %c0_i32 : i32, i32
  }
}

</mosaic_0001>

<bundles_post_ra>
// kernel: tpu_custom_call.1
= control target key start
LH: loop header
LB: loop body
LE: loop exit
PB: predicated region body
PF: predicated region fallthrough
CT: control target
= control target key end

     0   :  { %7 = vsyncpa [#allocation4], 0  ;;  %s239_s0 = inlined_call_operand.vmem [shape: s32[8,1], index: 0, kind: input, shape index: {}]   ;;  %s240_s1 = inlined_call_operand.hbm [shape: f32[8,512], index: 1, kind: input, shape index: {}]   ;;  %s241_s2 = inlined_call_operand.hbm [shape: f32[1,128], index: 2, kind: output, shape index: {}]  }
   0x1   :  { %8 = vsyncpa [#allocation5], 0  ;;  %s16_s11 = sshll.u32 %s240_s1, 4  ;;  %s212_s12 = smov [#allocation3]   ;;  %s17_s11 = int_to_ptr.hbm [resolvable:$true] %s16_s11 }
   0x2   :  { %s18_s13 = sshll.u32 %s212_s12, 4  ;;  %s19_s13 = int_to_ptr.vmem [resolvable:$true] %s18_s13 }
   0x3   :  { %21 = dma.hbm_to_vmem [thread:$0]  %s17_s11, 512, %s19_s13, [#allocation4]  }
   0x4   :  { %208 = dma.done.wait [#allocation4], 512  }
   0x5   :  { %209 = vsyncadd [#allocation4], 4294966784  ;;  %v213_v0 = vmov 0   ;;  %v34_v1 = vld [vmem:[%s239_s0] sm:$0xff]  ;;  %v39_v3 = vlaneseq  ;;  %v36_v6 = vld [vmem:[#allocation3 + $0x8] sm:$0xff]  ;;  %s214_s0 = smov [#allocation6]  }
   0x6   :  { %159 = vset.pattern.permute.xlu0 %v213_v0  ;;  %vm70_vm0 = vcmp.eq.s32.totalorder %v34_v1, 0  ;;  %v35_v4 = vld [vmem:[#allocation3] sm:$0xff]  ;;  %v37_v10 = vld [vmem:[#allocation3 + $0x10] sm:$0xff]  ;;  %v72_v11 = vsub.f32 -0.105360515, %v36_v6  ;;  %v38_v13 = vld [vmem:[#allocation3 + $0x18] sm:$0xff] }
   0x7   :  { %48 = vperm.xlu0 %159, %v34_v1   ;;  %v95_v2 = vsel %vm70_vm0, 1, %v213_v0  ;;  %v40_v5 = vand.u32 127, %v39_v3  ;;  %v79_v7 = vsub.f32 -8.536996, %v35_v4  ;;  %v71_v9 = vsub.f32 -0.105360515, %v35_v4 }
   0x8   :  { %v80_v12 = vsub.f32 -8.536996, %v36_v6  ;;  %v73_v16 = vsub.f32 -0.105360515, %v37_v10  ;;  %v81_v17 = vsub.f32 -8.536996, %v37_v10 }
   0x9   :  { %v41_v14 = vadd.s32 128, %v40_v5  ;;  %v83_v15 = vmul.f32 0.00019607843, %v79_v7  ;;  %vm56_vm1 = vcmp.eq.s32.totalorder %v40_v5, 0  ;;  %v42_v18 = vadd.s32 256, %v40_v5  ;;  %s142_s1 = sshll.u32 %s214_s0, 4  ;;  %s143_s1 = int_to_ptr.vmem [resolvable:$true] %s142_s1 }
   0xa   :  { %v75_v19 = vmul.f32 0.9, %v71_v9  ;;  %v74_v20 = vsub.f32 -0.105360515, %v38_v13  ;;  %v76_v21 = vmul.f32 0.9, %v72_v11 }
   0xb   :  { %v84_v22 = vmul.f32 0.00019607843, %v80_v12  ;;  %v82_v23 = vsub.f32 -8.536996, %v38_v13  ;;  %v87_v24 = vsel %vm56_vm1, 0.0, %v83_v15  ;;  %v43_v25 = vadd.s32 384, %v40_v5 }
   0xc   :  { %v77_v26 = vmul.f32 0.9, %v73_v16  ;;  %v85_v27 = vmul.f32 0.00019607843, %v81_v17  ;;  %v78_v29 = vmul.f32 0.9, %v74_v20 }
   0xd   :  { %v86_v32 = vmul.f32 0.00019607843, %v82_v23  ;;  %s144_s18 = sshll.u32 %s241_s2, 4  ;;  %s145_s18 = int_to_ptr.hbm [resolvable:$true] %s144_s18 }
   0xf   :  { %97 = vperm.xlu0 %159, %v95_v2  }
  0x79   :  { %v49_v8 = vpop.permute.xlu0 %48 }
  0x7a   :  { %vm50_vm2 = vcmp.eq.s32.totalorder %v40_v5, %v49_v8  ;;  %vm51_vm3 = vcmp.eq.s32.totalorder %v41_v14, %v49_v8  ;;  %vm52_vm4 = vcmp.eq.s32.totalorder %v42_v18, %v49_v8  ;;  %vm53_vm6 = vcmp.eq.s32.totalorder %v43_v25, %v49_v8 }
  0x7b   :  { %v91_v30 = vsel %vm50_vm2, %v75_v19, %v87_v24  ;;  %v92_v31 = vsel %vm51_vm3, %v76_v21, %v84_v22  ;;  %v93_v35 = vsel %vm52_vm4, %v77_v26, %v85_v27  ;;  %v94_v38 = vsel %vm53_vm6, %v78_v29, %v86_v32 }
  0x81   :  { %v98_v28 = vpop.permute.xlu0 %97 }
  0x82   :  { %vm99_vm5 = vcmp.eq.s32.totalorder %v98_v28, 1 }
  0x83   :  { %v100_v33 = vsel %vm99_vm5, 0.0, %v91_v30  ;;  %v101_v34 = vsel %vm99_vm5, 0.0, %v92_v31  ;;  %v102_v37 = vsel %vm99_vm5, 0.0, %v93_v35  ;;  %v103_v40 = vsel %vm99_vm5, 0.0, %v94_v38 }
  0x84   :  { %v123_v36 = vadd.f32 %v101_v34, %v100_v33 }
  0x86   :  { %v124_v39 = vadd.f32 %v123_v36, %v102_v37 }
  0x88   :  { %v125_v41 = vadd.f32 %v124_v39, %v103_v40 }
  0x8a   :  { %126 = vadd.xlane.f32.xlu1 %v125_v41 }
  0xfd   :  { %v127_v42 = vpop.xlane.xlu1 %126 }
  0xfe   :  { %v128_v43 = vrot.slane %v127_v42, 4 }
 0x100   :  { %v129_v44 = vadd.f32 %v128_v43, %v127_v42 }
 0x102   :  { %v130_v45 = vrot.slane %v129_v44, 2 }
 0x104   :  { %v131_v46 = vadd.f32 %v130_v45, %v129_v44 }
 0x106   :  { %v132_v47 = vrot.slane %v131_v46, 1 }
 0x108   :  { %v133_v48 = vadd.f32 %v132_v47, %v131_v46 }
 0x10a   :  { %154 = vpush %v133_v48 }
 0x13b   :  { %s155_s19 = spop %154 }
 0x13c   :  { %v135_v49 = vstv %s155_s19 }
 0x13d   :  { %136 = vst [vmem:[#allocation6] sm:$0x1] %v135_v49 }
 0x13e   :  { %147 = dma.vmem_to_hbm [thread:$0]  %s143_s1, 16, %s145_s18, [#allocation5]  }
 0x13f   :  { %210 = dma.done.wait [#allocation5], 16  }
 0x140   :  { %211 = vsyncadd [#allocation5], 4294967280 }
 0x141   :  { %152 = vsyncpa [#allocation4], 1 }
 0x142   :  { %153 = vsyncpa [#allocation5], 1 }

</bundles_post_ra>
